<compile_context>
chip_gen: v5e
topology: v5e:2x2
jax: 0.10.0
libtpu: 0.0.40
codegen_flags: <defaults>
</compile_context>

<pallas_src>
import functools

import numpy as np
import jax
import jax.numpy as jnp
from jax import lax
from jax.experimental import pallas as pl
from jax.experimental.pallas import tpu as pltpu


def _silu(y):
    # sigmoid as exp (EUP) + approximate reciprocal (EUP) -> keeps the epilogue off
    # the VALU divide path.
    return y * pl.reciprocal(1.0 + jnp.exp(-y), approx=True)


# ---------------------------------------------------------------------------
# Fused Bottleneck kernel, one (batch, row-strip) tile per grid step.
# Channels live on sublanes, flattened pixels live on lanes.
# ---------------------------------------------------------------------------
def _bottleneck_kernel(x_ref, w1_ref, w2_ref, b1_ref, b2_ref, m_ref,
                       o_ref, slab_ref, *, W, strip_h, use_add, small_conv1):
    L = strip_h * W                     # output lanes of this strip
    win = (strip_h + 2) * W             # strip + 1 halo row top/bottom (padded coords)
    chid_p = w1_ref.shape[0]
    s = pl.program_id(1)
    base = pl.multiple_of(s * L, L)     # strip start lane in the padded image

    # ---- conv1 (1x1) + folded-BN bias + SiLU over the haloed window -------------
    x_win = x_ref[0, :, pl.ds(base, win)]                       # (Cin, win) f32
    if small_conv1:
        # Tiny channel counts (test config): VPU broadcast-MACs in f32 beat an MXU
        # push/pop and avoid bf16 rounding on conv1.
        cin = x_win.shape[0]
        acc = w1_ref[:, 0:1] * x_win[0:1, :]
        for kk in range(1, cin):
            acc = acc + w1_ref[:, kk:kk + 1] * x_win[kk:kk + 1, :]
        y1 = acc + b1_ref[...]
    else:
        y1 = jnp.dot(w1_ref[...].astype(jnp.bfloat16), x_win.astype(jnp.bfloat16),
                     preferred_element_type=jnp.float32) + b1_ref[...]
    y1 = _silu(y1)                                              # (chid_p, win) f32

    # ---- im2col: 9 taps -> bf16 slab in VMEM scratch -----------------------------
    # Vertical shift = static row slice of the window; horizontal shift = lane roll
    # by +/-1 over an L-lane (128-multiple) tile (XLU).  Wrapped / out-of-image
    # positions are exactly the positions the precomputed {0,1} mask zeroes, which
    # reproduces the 3x3 conv's zero padding.  One vmul + one bf16 cast per tap.
    for dy in (-1, 0, 1):
        row = y1[:, (dy + 1) * W:(dy + 1) * W + L]              # (chid_p, L)
        for dx in (-1, 0, 1):
            t = (dy + 1) * 3 + (dx + 1)
            tap = pltpu.roll(row, (-dx) % L, axis=1) if dx else row
            tap = tap * m_ref[0, t:t + 1, :]
            slab_ref[pl.ds(t * chid_p, chid_p), :] = tap.astype(slab_ref.dtype)

    # ---- conv2 (3x3) as ONE K = 9*chid_p bf16 matmul + bias + SiLU (+ residual) --
    y2 = jnp.dot(w2_ref[...], slab_ref[...], preferred_element_type=jnp.float32)
    y2 = _silu(y2 + b2_ref[...])
    if use_add:                                                 # shortcut: Cin == Cout
        y2 = y2 + x_win[:, W:W + L]                             # original strip rows of x
    o_ref[0] = y2.astype(o_ref.dtype)


# ---------------------------------------------------------------------------
# Host-side helpers
# ---------------------------------------------------------------------------
def _pick_strip_h(H, W, chid_p, N):
    """Largest strip height dividing H with strip_h*W % 128 == 0 whose bf16 slab fits
    a ~8 MiB budget, then reduced until N*n_strips >= 4 (keep both v7x TCs busy)."""
    cands = [h for h in range(1, H + 1) if H % h == 0 and (h * W) % 128 == 0]
    if not cands:
        return H                       # degenerate small shapes: one (masked-vst) strip
    budget = 8 << 20
    good = [h for h in cands if 9 * chid_p * h * W * 2 <= budget] or [min(cands)]
    h = max(good)
    while N * (H // h) < 4 and any(c < h for c in cands):
        h = max(c for c in cands if c < h)
    return h


def _make_masks(H, W, strip_h):
    """(n_strips, 9, strip_h*W) {0,1} f32 zero-padding masks, precomputed once."""
    n_strips = H // strip_h
    L = strip_h * W
    p = np.arange(L)
    m = np.zeros((n_strips, 9, L), np.float32)
    for si in range(n_strips):
        r = si * strip_h + p // W
        c = p % W
        for t in range(9):
            dy, dx = t // 3 - 1, t % 3 - 1
            m[si, t] = ((r + dy >= 0) & (r + dy < H) &
                        (c + dx >= 0) & (c + dx < W)).astype(np.float32)
    return jnp.asarray(m)


def make_bottleneck_params(w1_oihw, w2_oihw, s1, b1, s2, b2):
    """Pack PyTorch-layout weights + folded-BN scale/bias into kernel layout.
    BN scales are folded into the conv weights; only biases remain."""
    Chid, Cin = w1_oihw.shape[0], w1_oihw.shape[1]
    Cout = w2_oihw.shape[0]
    chid_p = ((Chid + 15) // 16) * 16          # bf16 slab: 16-row tile alignment

    # conv1: (Chid, Cin, 1, 1) -> scale-folded (chid_p, Cin) f32, zero-padded rows
    w1f = w1_oihw[:, :, 0, 0] * s1[:, None]
    w1 = jnp.zeros((chid_p, Cin), jnp.float32).at[:Chid].set(w1f)
    b1p = jnp.zeros((chid_p, 1), jnp.float32).at[:Chid, 0].set(b1)

    # conv2: OIHW (Cout, Chid, 3, 3) -> scale-folded (Cout, 9*chid_p) bf16,
    # tap-major column blocks (column index = t*chid_p + i).
    w2f = w2_oihw * s2[:, None, None, None]
    w2_taps = jnp.transpose(w2f, (2, 3, 1, 0)).reshape(9, Chid, Cout)
    w2_pad = jnp.zeros((9, chid_p, Cout), jnp.float32).at[:, :Chid, :].set(w2_taps)
    w2 = jnp.transpose(w2_pad, (2, 0, 1)).reshape(Cout, 9 * chid_p)

    return {
        "w1": w1,                                    # f32 (VPU path; cast in-kernel for MXU)
        "w2": w2.astype(jnp.bfloat16),
        "b1": b1p,
        "b2": b2.reshape(Cout, 1).astype(jnp.float32),
    }


# ---------------------------------------------------------------------------
# Wrapper: NCHW in / NCHW out, matching the PyTorch module.
# ---------------------------------------------------------------------------
def bottleneck_forward(x_nchw, params, *, shortcut=True):
    N, Cin, H, W = x_nchw.shape
    Cout = params["w2"].shape[0]
    chid_p = params["w1"].shape[0]
    use_add = shortcut and Cin == Cout
    small_conv1 = Cin < 32                      # MXU only pays off at real YOLOX widths

    strip_h = _pick_strip_h(H, W, chid_p, N)
    n_strips = H // strip_h
    L = strip_h * W
    HWp = (H + 2) * W

    # channels -> sublanes, flattened pixels -> lanes; one zero row top/bottom so every
    # strip's conv1 window (strip + 1-row halo) is a uniform, in-bounds, aligned slice.
    x_pad = jnp.pad(x_nchw, ((0, 0), (0, 0), (1, 1), (0, 0))).reshape(N, Cin, HWp)
    masks = _make_masks(H, W, strip_h)          # (n_strips, 9, L)

    kern = functools.partial(_bottleneck_kernel, W=W, strip_h=strip_h,
                             use_add=use_add, small_conv1=small_conv1)

    # VMEM footprint estimate: x block + out + masks (double-buffered), bf16 slab,
    # weights, and slack for the f32 y1 window / temporaries.
    est = (2 * Cin * HWp * 4 + 2 * Cout * L * 4 + 2 * 9 * L * 4
           + 9 * chid_p * L * 2 + chid_p * Cin * 4 + Cout * 9 * chid_p * 2
           + 6 * chid_p * (L + 2 * W) * 4)
    vmem_limit = int(min(48 << 20, max(32 << 20, 2 * est)))

    out = pl.pallas_call(
        kern,
        out_shape=jax.ShapeDtypeStruct((N, Cout, H * W), x_nchw.dtype),
        grid=(N, n_strips),
        in_specs=[
            pl.BlockSpec((1, Cin, HWp), lambda n, s: (n, 0, 0)),       # padded x (resident per n)
            pl.BlockSpec((chid_p, Cin), lambda n, s: (0, 0)),          # w1 (scale-folded, f32)
            pl.BlockSpec((Cout, 9 * chid_p), lambda n, s: (0, 0)),     # w2 (scale-folded, bf16)
            pl.BlockSpec((chid_p, 1), lambda n, s: (0, 0)),            # b1
            pl.BlockSpec((Cout, 1), lambda n, s: (0, 0)),              # b2
            pl.BlockSpec((1, 9, L), lambda n, s: (s, 0, 0)),           # per-strip padding masks
        ],
        out_specs=pl.BlockSpec((1, Cout, L), lambda n, s: (n, 0, s)),
        scratch_shapes=[pltpu.VMEM((9 * chid_p, L), jnp.bfloat16)],    # bf16 im2col slab
        compiler_params=pltpu.CompilerParams(
            dimension_semantics=("parallel", "parallel"),
            vmem_limit_bytes=vmem_limit),
    )(x_pad, params["w1"], params["w2"], params["b1"], params["b2"], masks)
    return out.reshape(N, Cout, H, W)


# ---------------------------------------------------------------------------
# Pure-JAX f32 reference (correctness check only)
# ---------------------------------------------------------------------------
def _ref_conv_bn_silu(x, w_oihw, scale, bias, pad):
    y = lax.conv_general_dilated(
        x, w_oihw, window_strides=(1, 1), padding=[(pad, pad), (pad, pad)],
        dimension_numbers=("NCHW", "OIHW", "NCHW"))
    y = y * scale[None, :, None, None] + bias[None, :, None, None]
    return y * jax.nn.sigmoid(y)


def ref_bottleneck(x, w1_oihw, w2_oihw, s1, b1, s2, b2, use_add):
    y1 = _ref_conv_bn_silu(x, w1_oihw, s1, b1, pad=0)
    y2 = _ref_conv_bn_silu(y1, w2_oihw, s2, b2, pad=1)
    return y2 + x if use_add else y2


# ---------------------------------------------------------------------------
if __name__ == "__main__":
    # Bottleneck(in_channels=4, out_channels=4, shortcut=True, expansion=0.5,
    #            depthwise=False, act='silu')
    N, Cin, H, W = 2, 4, 16, 16
    Cout = 4
    Chid = int(Cout * 0.5)  # 2
    eps = 1e-5

    key = jax.random.PRNGKey(0)
    k = jax.random.split(key, 10)

    x = jax.random.normal(k[0], (N, Cin, H, W), jnp.float32)

    # conv1: (Chid, Cin, 1, 1)  |  conv2: (Cout, Chid, 3, 3)  (PyTorch OIHW)
    w1_oihw = 0.2 * jax.random.normal(k[1], (Chid, Cin, 1, 1), jnp.float32)
    w2_oihw = 0.2 * jax.random.normal(k[2], (Cout, Chid, 3, 3), jnp.float32)

    # BatchNorm params (inference-mode folding).
    g1 = 1.0 + 0.1 * jax.random.normal(k[3], (Chid,), jnp.float32)
    be1 = 0.1 * jax.random.normal(k[4], (Chid,), jnp.float32)
    m1 = 0.1 * jax.random.normal(k[5], (Chid,), jnp.float32)
    v1 = jnp.abs(jax.random.normal(k[6], (Chid,), jnp.float32)) + 0.5

    g2 = 1.0 + 0.1 * jax.random.normal(k[7], (Cout,), jnp.float32)
    be2 = 0.1 * jax.random.normal(k[8], (Cout,), jnp.float32)
    m2 = 0.1 * jax.random.normal(k[9], (Cout,), jnp.float32)
    v2 = jnp.abs(jax.random.normal(key, (Cout,), jnp.float32)) + 0.5

    s1 = g1 / jnp.sqrt(v1 + eps)
    b1 = be1 - m1 * s1
    s2 = g2 / jnp.sqrt(v2 + eps)
    b2 = be2 - m2 * s2

    params = make_bottleneck_params(w1_oihw, w2_oihw, s1, b1, s2, b2)

    out = bottleneck_forward(x, params, shortcut=True)
    out = jax.block_until_ready(out)

    ref = ref_bottleneck(x, w1_oihw, w2_oihw, s1, b1, s2, b2, use_add=True)
    ref = jax.block_until_ready(ref)

    assert out.shape == (N, Cout, H, W)
    # conv2 runs through a bf16 slab / bf16 weights and the sigmoid uses the EUP
    # approximate reciprocal, so compare against the f32 reference at a loosened
    # tolerance (conv1 itself is exact f32 on the small-channel VPU path).
    max_err = float(jnp.max(jnp.abs(out - ref)))
    assert jnp.allclose(out, ref, atol=5e-2, rtol=5e-2), max_err
    print("KERNEL_OK")
</pallas_src>

<mosaic_0001>
module attributes {stable_mosaic.version = 11 : i64} {
  func.func @_bottleneck_kernel(%arg0: i32, %arg1: i32, %arg2: memref<1x4x288xf32, #tpu.memory_space<vmem>>, %arg3: memref<16x4xf32, #tpu.memory_space<vmem>>, %arg4: memref<4x144xbf16, #tpu.memory_space<vmem>>, %arg5: memref<16x1xf32, #tpu.memory_space<vmem>>, %arg6: memref<4x1xf32, #tpu.memory_space<vmem>>, %arg7: memref<1x9x128xf32, #tpu.memory_space<vmem>>, %arg8: memref<1x4x128xf32, #tpu.memory_space<vmem>>, %arg9: memref<144x128xbf16, #tpu.memory_space<vmem>>) attributes {dimension_semantics = [#tpu.dimension_semantics<parallel>, #tpu.dimension_semantics<parallel>], iteration_bounds = array<i64: 2, 2>, scalar_prefetch = 0 : i64, scratch_operands = 1 : i64, tpu.core_type = #tpu.core_type<tc>, window_params = [{transform_indices = @transform_0, window_bounds = array<i64: 1, 4, 288>}, {pipeline_mode = #tpu.pipeline_mode<synchronous>, transform_indices = @transform_1, window_bounds = array<i64: 16, 4>}, {pipeline_mode = #tpu.pipeline_mode<synchronous>, transform_indices = @transform_2, window_bounds = array<i64: 4, 144>}, {pipeline_mode = #tpu.pipeline_mode<synchronous>, transform_indices = @transform_3, window_bounds = array<i64: 16, 1>}, {pipeline_mode = #tpu.pipeline_mode<synchronous>, transform_indices = @transform_4, window_bounds = array<i64: 4, 1>}, {transform_indices = @transform_5, window_bounds = array<i64: 1, 9, 128>}, {transform_indices = @transform_6, window_bounds = array<i64: 1, 4, 128>}]} {
    %c128_i32 = arith.constant 128 : i32
    %0 = arith.muli %arg1, %c128_i32 : i32
    %1 = tpu.assume_multiple %0, 128 : i32
    %c0 = arith.constant 0 : index
    %c0_0 = arith.constant 0 : index
    %2 = arith.index_cast %1 : i32 to index
    %3 = vector.load %arg2[%c0, %c0_0, %2] : memref<1x4x288xf32, #tpu.memory_space<vmem>>, vector<1x4x160xf32>
    %4 = vector.shape_cast %3 : vector<1x4x160xf32> to vector<4x160xf32>
    %c0_1 = arith.constant 0 : index
    %c0_2 = arith.constant 0 : index
    %5 = vector.load %arg3[%c0_1, %c0_2] : memref<16x4xf32, #tpu.memory_space<vmem>>, vector<16x1xf32>
    %6 = vector.extract_strided_slice %4 {offsets = [0, 0], sizes = [1, 160], strides = [1, 1]} : vector<4x160xf32> to vector<1x160xf32>
    %7 = vector.broadcast %5 : vector<16x1xf32> to vector<16x160xf32>
    %8 = vector.broadcast %6 : vector<1x160xf32> to vector<16x160xf32>
    %9 = arith.mulf %7, %8 : vector<16x160xf32>
    %c0_3 = arith.constant 0 : index
    %c1 = arith.constant 1 : index
    %10 = vector.load %arg3[%c0_3, %c1] : memref<16x4xf32, #tpu.memory_space<vmem>>, vector<16x1xf32>
    %11 = vector.extract_strided_slice %4 {offsets = [1, 0], sizes = [1, 160], strides = [1, 1]} : vector<4x160xf32> to vector<1x160xf32>
    %12 = vector.broadcast %10 : vector<16x1xf32> to vector<16x160xf32>
    %13 = vector.broadcast %11 : vector<1x160xf32> to vector<16x160xf32>
    %14 = arith.mulf %12, %13 : vector<16x160xf32>
    %15 = arith.addf %9, %14 : vector<16x160xf32>
    %c0_4 = arith.constant 0 : index
    %c2 = arith.constant 2 : index
    %16 = vector.load %arg3[%c0_4, %c2] : memref<16x4xf32, #tpu.memory_space<vmem>>, vector<16x1xf32>
    %17 = vector.extract_strided_slice %4 {offsets = [2, 0], sizes = [1, 160], strides = [1, 1]} : vector<4x160xf32> to vector<1x160xf32>
    %18 = vector.broadcast %16 : vector<16x1xf32> to vector<16x160xf32>
    %19 = vector.broadcast %17 : vector<1x160xf32> to vector<16x160xf32>
    %20 = arith.mulf %18, %19 : vector<16x160xf32>
    %21 = arith.addf %15, %20 : vector<16x160xf32>
    %c0_5 = arith.constant 0 : index
    %c3 = arith.constant 3 : index
    %22 = vector.load %arg3[%c0_5, %c3] : memref<16x4xf32, #tpu.memory_space<vmem>>, vector<16x1xf32>
    %23 = vector.extract_strided_slice %4 {offsets = [3, 0], sizes = [1, 160], strides = [1, 1]} : vector<4x160xf32> to vector<1x160xf32>
    %24 = vector.broadcast %22 : vector<16x1xf32> to vector<16x160xf32>
    %25 = vector.broadcast %23 : vector<1x160xf32> to vector<16x160xf32>
    %26 = arith.mulf %24, %25 : vector<16x160xf32>
    %27 = arith.addf %21, %26 : vector<16x160xf32>
    %c0_6 = arith.constant 0 : index
    %c0_7 = arith.constant 0 : index
    %28 = vector.load %arg5[%c0_6, %c0_7] : memref<16x1xf32, #tpu.memory_space<vmem>>, vector<16x1xf32>
    %29 = vector.broadcast %28 : vector<16x1xf32> to vector<16x160xf32>
    %30 = arith.addf %27, %29 : vector<16x160xf32>
    %cst = arith.constant 0.000000e+00 : f32
    %31 = vector.broadcast %cst : f32 to vector<16x160xf32>
    %32 = arith.subf %31, %30 : vector<16x160xf32>
    %33 = math.exp %32 : vector<16x160xf32>
    %cst_8 = arith.constant 1.000000e+00 : f32
    %34 = vector.broadcast %cst_8 : f32 to vector<16x160xf32>
    %35 = arith.addf %34, %33 : vector<16x160xf32>
    %36 = tpu.reciprocal %35 {approx = true} : vector<16x160xf32> -> vector<16x160xf32>
    %37 = arith.mulf %30, %36 : vector<16x160xf32>
    %38 = vector.extract_strided_slice %37 {offsets = [0, 0], sizes = [16, 128], strides = [1, 1]} : vector<16x160xf32> to vector<16x128xf32>
    %c1_i32 = arith.constant 1 : i32
    %39 = tpu.dynamic_rotate %38 by %c1_i32 dim 1 : vector<16x128xf32>, i32 -> vector<16x128xf32>
    %c0_9 = arith.constant 0 : index
    %c0_10 = arith.constant 0 : index
    %c0_11 = arith.constant 0 : index
    %40 = vector.load %arg7[%c0_9, %c0_10, %c0_11] : memref<1x9x128xf32, #tpu.memory_space<vmem>>, vector<1x1x128xf32>
    %41 = vector.shape_cast %40 : vector<1x1x128xf32> to vector<1x128xf32>
    %42 = vector.broadcast %41 : vector<1x128xf32> to vector<16x128xf32>
    %43 = arith.mulf %39, %42 : vector<16x128xf32>
    %44 = arith.truncf %43 : vector<16x128xf32> to vector<16x128xbf16>
    %c0_12 = arith.constant 0 : index
    %c0_13 = arith.constant 0 : index
    %45 = vector.load %arg9[%c0_12, %c0_13] : memref<144x128xbf16, #tpu.memory_space<vmem>>, vector<16x128xbf16>
    tpu.vector_store %arg9[%c0_12, %c0_13], %44 {strides = array<i32>} : memref<144x128xbf16, #tpu.memory_space<vmem>>, vector<16x128xbf16>,
    %c0_14 = arith.constant 0 : index
    %c1_15 = arith.constant 1 : index
    %c0_16 = arith.constant 0 : index
    %46 = vector.load %arg7[%c0_14, %c1_15, %c0_16] : memref<1x9x128xf32, #tpu.memory_space<vmem>>, vector<1x1x128xf32>
    %47 = vector.shape_cast %46 : vector<1x1x128xf32> to vector<1x128xf32>
    %48 = vector.broadcast %47 : vector<1x128xf32> to vector<16x128xf32>
    %49 = arith.mulf %38, %48 : vector<16x128xf32>
    %50 = arith.truncf %49 : vector<16x128xf32> to vector<16x128xbf16>
    %c16 = arith.constant 16 : index
    %c0_17 = arith.constant 0 : index
    %51 = vector.load %arg9[%c16, %c0_17] : memref<144x128xbf16, #tpu.memory_space<vmem>>, vector<16x128xbf16>
    tpu.vector_store %arg9[%c16, %c0_17], %50 {strides = array<i32>} : memref<144x128xbf16, #tpu.memory_space<vmem>>, vector<16x128xbf16>,
    %c127_i32 = arith.constant 127 : i32
    %52 = tpu.dynamic_rotate %38 by %c127_i32 dim 1 : vector<16x128xf32>, i32 -> vector<16x128xf32>
    %c0_18 = arith.constant 0 : index
    %c2_19 = arith.constant 2 : index
    %c0_20 = arith.constant 0 : index
    %53 = vector.load %arg7[%c0_18, %c2_19, %c0_20] : memref<1x9x128xf32, #tpu.memory_space<vmem>>, vector<1x1x128xf32>
    %54 = vector.shape_cast %53 : vector<1x1x128xf32> to vector<1x128xf32>
    %55 = vector.broadcast %54 : vector<1x128xf32> to vector<16x128xf32>
    %56 = arith.mulf %52, %55 : vector<16x128xf32>
    %57 = arith.truncf %56 : vector<16x128xf32> to vector<16x128xbf16>
    %c32 = arith.constant 32 : index
    %c0_21 = arith.constant 0 : index
    %58 = vector.load %arg9[%c32, %c0_21] : memref<144x128xbf16, #tpu.memory_space<vmem>>, vector<16x128xbf16>
    tpu.vector_store %arg9[%c32, %c0_21], %57 {strides = array<i32>} : memref<144x128xbf16, #tpu.memory_space<vmem>>, vector<16x128xbf16>,
    %59 = vector.extract_strided_slice %37 {offsets = [0, 16], sizes = [16, 128], strides = [1, 1]} : vector<16x160xf32> to vector<16x128xf32>
    %c1_i32_22 = arith.constant 1 : i32
    %60 = tpu.dynamic_rotate %59 by %c1_i32_22 dim 1 : vector<16x128xf32>, i32 -> vector<16x128xf32>
    %c0_23 = arith.constant 0 : index
    %c3_24 = arith.constant 3 : index
    %c0_25 = arith.constant 0 : index
    %61 = vector.load %arg7[%c0_23, %c3_24, %c0_25] : memref<1x9x128xf32, #tpu.memory_space<vmem>>, vector<1x1x128xf32>
    %62 = vector.shape_cast %61 : vector<1x1x128xf32> to vector<1x128xf32>
    %63 = vector.broadcast %62 : vector<1x128xf32> to vector<16x128xf32>
    %64 = arith.mulf %60, %63 : vector<16x128xf32>
    %65 = arith.truncf %64 : vector<16x128xf32> to vector<16x128xbf16>
    %c48 = arith.constant 48 : index
    %c0_26 = arith.constant 0 : index
    %66 = vector.load %arg9[%c48, %c0_26] : memref<144x128xbf16, #tpu.memory_space<vmem>>, vector<16x128xbf16>
    tpu.vector_store %arg9[%c48, %c0_26], %65 {strides = array<i32>} : memref<144x128xbf16, #tpu.memory_space<vmem>>, vector<16x128xbf16>,
    %c0_27 = arith.constant 0 : index
    %c4 = arith.constant 4 : index
    %c0_28 = arith.constant 0 : index
    %67 = vector.load %arg7[%c0_27, %c4, %c0_28] : memref<1x9x128xf32, #tpu.memory_space<vmem>>, vector<1x1x128xf32>
    %68 = vector.shape_cast %67 : vector<1x1x128xf32> to vector<1x128xf32>
    %69 = vector.broadcast %68 : vector<1x128xf32> to vector<16x128xf32>
    %70 = arith.mulf %59, %69 : vector<16x128xf32>
    %71 = arith.truncf %70 : vector<16x128xf32> to vector<16x128xbf16>
    %c64 = arith.constant 64 : index
    %c0_29 = arith.constant 0 : index
    %72 = vector.load %arg9[%c64, %c0_29] : memref<144x128xbf16, #tpu.memory_space<vmem>>, vector<16x128xbf16>
    tpu.vector_store %arg9[%c64, %c0_29], %71 {strides = array<i32>} : memref<144x128xbf16, #tpu.memory_space<vmem>>, vector<16x128xbf16>,
    %c127_i32_30 = arith.constant 127 : i32
    %73 = tpu.dynamic_rotate %59 by %c127_i32_30 dim 1 : vector<16x128xf32>, i32 -> vector<16x128xf32>
    %c0_31 = arith.constant 0 : index
    %c5 = arith.constant 5 : index
    %c0_32 = arith.constant 0 : index
    %74 = vector.load %arg7[%c0_31, %c5, %c0_32] : memref<1x9x128xf32, #tpu.memory_space<vmem>>, vector<1x1x128xf32>
    %75 = vector.shape_cast %74 : vector<1x1x128xf32> to vector<1x128xf32>
    %76 = vector.broadcast %75 : vector<1x128xf32> to vector<16x128xf32>
    %77 = arith.mulf %73, %76 : vector<16x128xf32>
    %78 = arith.truncf %77 : vector<16x128xf32> to vector<16x128xbf16>
    %c80 = arith.constant 80 : index
    %c0_33 = arith.constant 0 : index
    %79 = vector.load %arg9[%c80, %c0_33] : memref<144x128xbf16, #tpu.memory_space<vmem>>, vector<16x128xbf16>
    tpu.vector_store %arg9[%c80, %c0_33], %78 {strides = array<i32>} : memref<144x128xbf16, #tpu.memory_space<vmem>>, vector<16x128xbf16>,
    %80 = vector.extract_strided_slice %37 {offsets = [0, 32], sizes = [16, 128], strides = [1, 1]} : vector<16x160xf32> to vector<16x128xf32>
    %c1_i32_34 = arith.constant 1 : i32
    %81 = tpu.dynamic_rotate %80 by %c1_i32_34 dim 1 : vector<16x128xf32>, i32 -> vector<16x128xf32>
    %c0_35 = arith.constant 0 : index
    %c6 = arith.constant 6 : index
    %c0_36 = arith.constant 0 : index
    %82 = vector.load %arg7[%c0_35, %c6, %c0_36] : memref<1x9x128xf32, #tpu.memory_space<vmem>>, vector<1x1x128xf32>
    %83 = vector.shape_cast %82 : vector<1x1x128xf32> to vector<1x128xf32>
    %84 = vector.broadcast %83 : vector<1x128xf32> to vector<16x128xf32>
    %85 = arith.mulf %81, %84 : vector<16x128xf32>
    %86 = arith.truncf %85 : vector<16x128xf32> to vector<16x128xbf16>
    %c96 = arith.constant 96 : index
    %c0_37 = arith.constant 0 : index
    %87 = vector.load %arg9[%c96, %c0_37] : memref<144x128xbf16, #tpu.memory_space<vmem>>, vector<16x128xbf16>
    tpu.vector_store %arg9[%c96, %c0_37], %86 {strides = array<i32>} : memref<144x128xbf16, #tpu.memory_space<vmem>>, vector<16x128xbf16>,
    %c0_38 = arith.constant 0 : index
    %c7 = arith.constant 7 : index
    %c0_39 = arith.constant 0 : index
    %88 = vector.load %arg7[%c0_38, %c7, %c0_39] : memref<1x9x128xf32, #tpu.memory_space<vmem>>, vector<1x1x128xf32>
    %89 = vector.shape_cast %88 : vector<1x1x128xf32> to vector<1x128xf32>
    %90 = vector.broadcast %89 : vector<1x128xf32> to vector<16x128xf32>
    %91 = arith.mulf %80, %90 : vector<16x128xf32>
    %92 = arith.truncf %91 : vector<16x128xf32> to vector<16x128xbf16>
    %c112 = arith.constant 112 : index
    %c0_40 = arith.constant 0 : index
    %93 = vector.load %arg9[%c112, %c0_40] : memref<144x128xbf16, #tpu.memory_space<vmem>>, vector<16x128xbf16>
    tpu.vector_store %arg9[%c112, %c0_40], %92 {strides = array<i32>} : memref<144x128xbf16, #tpu.memory_space<vmem>>, vector<16x128xbf16>,
    %c127_i32_41 = arith.constant 127 : i32
    %94 = tpu.dynamic_rotate %80 by %c127_i32_41 dim 1 : vector<16x128xf32>, i32 -> vector<16x128xf32>
    %c0_42 = arith.constant 0 : index
    %c8 = arith.constant 8 : index
    %c0_43 = arith.constant 0 : index
    %95 = vector.load %arg7[%c0_42, %c8, %c0_43] : memref<1x9x128xf32, #tpu.memory_space<vmem>>, vector<1x1x128xf32>
    %96 = vector.shape_cast %95 : vector<1x1x128xf32> to vector<1x128xf32>
    %97 = vector.broadcast %96 : vector<1x128xf32> to vector<16x128xf32>
    %98 = arith.mulf %94, %97 : vector<16x128xf32>
    %99 = arith.truncf %98 : vector<16x128xf32> to vector<16x128xbf16>
    %c128 = arith.constant 128 : index
    %c0_44 = arith.constant 0 : index
    %100 = vector.load %arg9[%c128, %c0_44] : memref<144x128xbf16, #tpu.memory_space<vmem>>, vector<16x128xbf16>
    tpu.vector_store %arg9[%c128, %c0_44], %99 {strides = array<i32>} : memref<144x128xbf16, #tpu.memory_space<vmem>>, vector<16x128xbf16>,
    %c0_45 = arith.constant 0 : index
    %c0_46 = arith.constant 0 : index
    %101 = vector.load %arg4[%c0_45, %c0_46] : memref<4x144xbf16, #tpu.memory_space<vmem>>, vector<4x144xbf16>
    %c0_47 = arith.constant 0 : index
    %c0_48 = arith.constant 0 : index
    %102 = vector.load %arg9[%c0_47, %c0_48] : memref<144x128xbf16, #tpu.memory_space<vmem>>, vector<144x128xbf16>
    %cst_49 = arith.constant dense<0.000000e+00> : vector<4x128xf32>
    %103 = tpu.matmul %101, %102, %cst_49 {dimension_numbers = #tpu.dot_dimension_numbers<[1], [0], [0], [1], [0, 0, 1, 1], [], []>} : vector<4x144xbf16>, vector<144x128xbf16>, vector<4x128xf32> -> vector<4x128xf32>
    %c0_50 = arith.constant 0 : index
    %c0_51 = arith.constant 0 : index
    %104 = vector.load %arg6[%c0_50, %c0_51] : memref<4x1xf32, #tpu.memory_space<vmem>>, vector<4x1xf32>
    %105 = vector.broadcast %104 : vector<4x1xf32> to vector<4x128xf32>
    %106 = arith.addf %103, %105 : vector<4x128xf32>
    %cst_52 = arith.constant 0.000000e+00 : f32
    %107 = vector.broadcast %cst_52 : f32 to vector<4x128xf32>
    %108 = arith.subf %107, %106 : vector<4x128xf32>
    %109 = math.exp %108 : vector<4x128xf32>
    %cst_53 = arith.constant 1.000000e+00 : f32
    %110 = vector.broadcast %cst_53 : f32 to vector<4x128xf32>
    %111 = arith.addf %110, %109 : vector<4x128xf32>
    %112 = tpu.reciprocal %111 {approx = true} : vector<4x128xf32> -> vector<4x128xf32>
    %113 = arith.mulf %106, %112 : vector<4x128xf32>
    %114 = vector.extract_strided_slice %4 {offsets = [0, 16], sizes = [4, 128], strides = [1, 1]} : vector<4x160xf32> to vector<4x128xf32>
    %115 = arith.addf %113, %114 : vector<4x128xf32>
    %c0_54 = arith.constant 0 : index
    %c0_55 = arith.constant 0 : index
    %c0_56 = arith.constant 0 : index
    %116 = vector.load %arg8[%c0_54, %c0_55, %c0_56] : memref<1x4x128xf32, #tpu.memory_space<vmem>>, vector<1x4x128xf32>
    %117 = vector.shape_cast %116 : vector<1x4x128xf32> to vector<4x128xf32>
    %118 = vector.shape_cast %115 : vector<4x128xf32> to vector<1x4x128xf32>
    tpu.vector_store %arg8[%c0_54, %c0_55, %c0_56], %118 {strides = array<i32>} : memref<1x4x128xf32, #tpu.memory_space<vmem>>, vector<1x4x128xf32>,
    return
  }
  func.func @transform_0(%arg0: i32, %arg1: i32) -> (i32, i32, i32) {
    %c0_i32 = arith.constant 0 : i32
    %c0_i32_0 = arith.constant 0 : i32
    %c0_i32_1 = arith.constant 0 : i32
    return %arg0, %c0_i32, %c0_i32_0 : i32, i32, i32
  }
  func.func @transform_1(%arg0: i32, %arg1: i32) -> (i32, i32) {
    %c0_i32 = arith.constant 0 : i32
    %c0_i32_0 = arith.constant 0 : i32
    %c0_i32_1 = arith.constant 0 : i32
    return %c0_i32, %c0_i32_0 : i32, i32
  }
  func.func @transform_2(%arg0: i32, %arg1: i32) -> (i32, i32) {
    %c0_i32 = arith.constant 0 : i32
    %c0_i32_0 = arith.constant 0 : i32
    %c0_i32_1 = arith.constant 0 : i32
    return %c0_i32, %c0_i32_0 : i32, i32
  }
  func.func @transform_3(%arg0: i32, %arg1: i32) -> (i32, i32) {
    %c0_i32 = arith.constant 0 : i32
    %c0_i32_0 = arith.constant 0 : i32
    %c0_i32_1 = arith.constant 0 : i32
    return %c0_i32, %c0_i32_0 : i32, i32
  }
  func.func @transform_4(%arg0: i32, %arg1: i32) -> (i32, i32) {
    %c0_i32 = arith.constant 0 : i32
    %c0_i32_0 = arith.constant 0 : i32
    %c0_i32_1 = arith.constant 0 : i32
    return %c0_i32, %c0_i32_0 : i32, i32
  }
  func.func @transform_5(%arg0: i32, %arg1: i32) -> (i32, i32, i32) {
    %c0_i32 = arith.constant 0 : i32
    %c0_i32_0 = arith.constant 0 : i32
    %c0_i32_1 = arith.constant 0 : i32
    return %arg1, %c0_i32, %c0_i32_0 : i32, i32, i32
  }
  func.func @transform_6(%arg0: i32, %arg1: i32) -> (i32, i32, i32) {
    %c0_i32 = arith.constant 0 : i32
    %c0_i32_0 = arith.constant 0 : i32
    return %arg0, %c0_i32, %arg1 : i32, i32, i32
  }
}

</mosaic_0001>

<bundles_post_ra>
// kernel: tpu_custom_call.1
= control target key start
LH: loop header
LB: loop body
LE: loop exit
PB: predicated region body
PF: predicated region fallthrough
CT: control target
= control target key end

     0   :  { %s1395_s0 = inlined_call_operand.vmem [shape: f32[2,4,288], index: 0, kind: input, shape index: {}]   ;;  %s1396_s1 = inlined_call_operand.vmem [shape: f32[16,4], index: 1, kind: input, shape index: {}]   ;;  %s1397_s2 = inlined_call_operand.vmem [shape: bf16[4,144], index: 2, kind: input, shape index: {}]   ;;  %s1398_s3 = inlined_call_operand.vmem [shape: f32[16,1], index: 3, kind: input, shape index: {}]   ;;  %s1399_s4 = inlined_call_operand.vmem [shape: f32[4,1], index: 4, kind: input, shape index: {}]   ;;  %s1400_s5 = inlined_call_operand.vmem [shape: f32[2,9,128], index: 5, kind: input, shape index: {}]   ;;  %s1401_s6 = inlined_call_operand.hbm [shape: f32[2,4,256], index: 6, kind: output, shape index: {}]  }
   0x1   :  { %1402 = sst [smem:[#allocation6_spill]] %s1396_s1 }
   0x2   :  { %1403 = sst [smem:[#allocation7_spill]] %s1400_s5 }
   0x3   :  { %11 = vsyncpa [#allocation4], 0 }
   0x4   :  { %13 = vsyncpa [#allocation4 + $0x1], 0  ;;  %s1182_s21 = smov 0   ;;  %s1184_s22 = smov 0  }
   0x5   :  { %s1186_s23 = smov 0   ;;  %s1188_s24 = smov 0  }
   0x6   :  { %s1190_s25 = smov 0   ;;  %s1192_s26 = smov 0  }
   0x7   :  { %s1194_s27 = smov 0   ;;  %s1196_s28 = smov 0  }
   0x8 LB: > { %s818_s29 = sadd.s32 4294967295, %s1135_s28   ;;  %s819_s30 = sadd.s32 4294967294, %s1135_s28   ;;  %s1135_s28 = sphi %s1196_s28, %s19_s28   ;;  %s1131_s27 = sphi %s1194_s27, %s1414_s27   ;;  %s1127_s26 = sphi %s1192_s26, %s1413_s26   ;;  %s1123_s25 = sphi %s1190_s25, %s1412_s25   ;;  %s1119_s24 = sphi %s1188_s24, %s1411_s24   ;;  %s1115_s23 = sphi %s1186_s23, %s1410_s23   ;;  %s1111_s22 = sphi %s1184_s22, %s1409_s22   ;;  %s1107_s21 = sphi %s1182_s21, %s1408_s21  }
   0x9   : > { %s28_s7 = sadd.s32 1, %s1127_s26  ;;  %s31_s8 = sadd.s32 1, %s1131_s27 }
   0xa   : > { %p29_p0 = scmp.ge.s32.totalorder %s28_s7, 2  ;;  %p186_p1 = scmp.ne.s32.totalorder %s1115_s23, %s1111_s22 }
   0xb   : > { %p187_p2 = scmp.eq.s32.totalorder %s818_s29, 3  ;;  %p192_p5 = scmp.ne.s32.totalorder %s1111_s22, %s1107_s21 }
   0xc   : > { %s1416_s7 = smov (%p29_p0, %s28_s7), 0  ;;  %s1418_s8 = smov (!%p29_p0, %s31_s8), %s1131_s27 }
   0xd   : > { %s172_s9 = ssub.s32 %s1127_s26, %s1416_s7  ;;  %p1233_p3 = por %p187_p2, %p186_p1 }
   0xe   : > { %p33_p4 = scmp.ge.s32.totalorder %s1418_s8, 2  ;;  %p193_p6 = scmp.eq.s32.totalorder %s819_s30, 3 }
   0xf   : > { %p822_p7 = scmp.ge.s32.totalorder %s1135_s28, 1  ;;  %p239_p9 = scmp.lt.s32.totalorder %s1135_s28, 5 }
  0x10   : > { %s1420_s8 = smov (%p33_p4, %s1418_s8), 0  ;;  %p1242_p8 = por %p193_p6, %p192_p5 }
  0x11   : > { %s171_s12 = ssub.s32 %s1131_s27, %s1420_s8  ;;  %s176_s13 = sadd.s32 1, %s1115_s23 }
  0x12   : > { %s173_s14 = sor.u32 %s172_s9, %s171_s12  ;;  %p240_p10 = pnand %p822_p7, %p239_p9 }
  0x13   : > { %p174_p11 = scmp.eq.s32.totalorder %s173_s14, 0  ;;  %s1406_s1 = sld [smem:[#allocation6_spill]] (!%p240_p10) }
  0x14   : > { %243 = sbr.rel (%p240_p10) target bundleno = 628 (0x274), region = 44  ;;  %p279_p12 = scmp.lt.s32.totalorder (!%p240_p10), %s1119_s24, 1 }
  0x15   : > { %s1251_s15 = scalar_select %p174_p11, %s1115_s23, %s176_s13  }
  0x16   : > { %s1407_s5 = sld [smem:[#allocation7_spill]] (!%p240_p10)  ;;  %p274_p13 = scmp.lt.s32.totalorder (!%p240_p10), %s1123_s25, 1 }
  0x17   : > { %s827_s20 = sshll.u32 (!%p240_p10), %s1119_s24, 7  ;;  %s1144_s16 = smov (!%p240_p10), 16  }
  0x18   : > { %s286_s9 = sshra.s32 (!%p240_p10), %s827_s20, 7  ;;  %s1145_s17 = smov (!%p240_p10), 1  }
  0x19   : > { %v291_v0 = vld [vmem:[%s1406_s1] sm:$0xff]  ;;  %v1137_v1 = vmov 1   ;;  %v1138_v2 = vmov 0   ;;  %v1139_v3 = vmov 2   ;;  %s280_s18 = scalar_select %p279_p12, %s1119_s24, 1  ;;  %v292_v4 = vld [vmem:[%s1406_s1 + $0x8] sm:$0xff] }
  0x1a   : > { %1005 = vset.pattern.permute.xlu1 %v1137_v1  ;;  %1004 = vset.pattern.permute.xlu0 %v1138_v2  ;;  %v1140_v5 = vmov 3   ;;  %v380_v6 = vld [vmem:[%s1398_s3] sm:$0xff]  ;;  %v381_v7 = vld [vmem:[%s1398_s3 + $0x8] sm:$0xff]  ;;  %s828_s1 = sshll.u32 %s286_s9, 2  ;;  %vm528_vm0 = vcmask 785408   ;;  %vm464_vm1 = vcmask 916480  }
  0x1b   : > { %315 = vperm.xlu1 %1005, %v291_v0   ;;  %295 = vperm.xlu0 %1004, %v291_v0   ;;  %s871_s19 = sshll.u32 %s280_s18, 4  ;;  %s1141_s18 = smov 32   ;;  %vm668_vm2 = vcmask 130048  }
  0x1c   : > { %1006 = vset.pattern.permute.xlu2 %v1139_v3  ;;  %s1261_s30 = scalar_lea.vmem %s1407_s5, %s871_s19  ;;  %s271_s12 = sand.u32 1, %s1111_s22  }
  0x1d   : > { %337 = vperm.xlu2 %1006, %v291_v0   ;;  %v1012_v8 = vld [vmem:[%s1261_s30 + $0x7] ss:$0 sm:$0xff]  ;;  %s275_s19 = scalar_select %p274_p13, %s1123_s25, 1 }
  0x1f   : > { %s922_s29 = smul.u32 12, %s275_s19 }
  0x21   : > { %s278_s14 = scalar_lea.vmem %s1395_s0, %s922_s29 }
  0x22   : > { %s289_s5 = scalar_lea.vmem %s278_s14, %s828_s1  ;;  %s1142_s1 = smov 96  }
  0x23   : > { %319 = vperm.xlu1 %1005, %v292_v4   ;;  %300 = vperm.xlu0 %1004, %v292_v4   ;;  %v1279_v9 = vld [vmem:[%s289_s5] sm:$0xff]  ;;  %s1143_s5 = smov 112   ;;  %s823_s14 = sshll.u32 %s271_s12, 2 }
  0x24   : > { %v322_v13 = vperm.slane %v1279_v9, 1  ;;  %v323_v14 = vperm.slane %v1279_v9, 5  ;;  %v304_v15 = vperm.slane %v1279_v9, 0  ;;  %v305_v16 = vperm.slane %v1279_v9, 4 }
  0x25   : > { %341 = vperm.xlu2 %1006, %v292_v4   ;;  %v344_v17 = vperm.slane %v1279_v9, 2  ;;  %v345_v18 = vperm.slane %v1279_v9, 6  ;;  %v366_v27 = vperm.slane %v1279_v9, 3  ;;  %v367_v28 = vperm.slane %v1279_v9, 7 }
  0x26   : > { %v326_v19 = vperm.slane %v322_v13, 1  ;;  %v327_v20 = vperm.slane %v323_v14, 1  ;;  %v308_v21 = vperm.slane %v304_v15, 0  ;;  %v309_v22 = vperm.slane %v305_v16, 0 }
  0x27   : > { %v348_v25 = vperm.slane %v344_v17, 2  ;;  %v349_v26 = vperm.slane %v345_v18, 2  ;;  %v370_v38 = vperm.slane %v366_v27, 3  ;;  %v371_v39 = vperm.slane %v367_v28, 3 }
  0x2b   : > { %1008 = vset.pattern.permute.xlu1 %v1140_v5  ;;  %1007 = vset.pattern.permute.xlu0 %v1140_v5 }
  0x2c   : > { %363 = vperm.xlu1 %1008, %v292_v4   ;;  %359 = vperm.xlu0 %1007, %v291_v0  }
  0x2d   : > { %1009 = vset.pattern.permute.xlu2 %v1138_v2 }
  0x2e   : > { %384 = vperm.xlu2 %1009, %v380_v6  }
  0x34   : > { %1010 = vset.pattern.permute.xlu1 %v1138_v2  ;;  %1011 = vset.pattern.permute.xlu0 %v1138_v2 }
  0x35   : > { %389 = vperm.xlu1 %1010, %v381_v7  }
  0x36   : > { %548 = vrot.lane.b32.xlu2 %v1012_v8, %s1141_s18  ;;  %s1146_s18 = smov 127  }
  0x77   : > { %v338_v12 = vpop.permute.xlu2 %337 }
  0x78   : > { %v350_v34 = vmul.f32 %v348_v25, %v338_v12  ;;  %v351_v35 = vmul.f32 %v349_v26, %v338_v12 }
  0x7f   : > { %v342_v33 = vpop.permute.xlu2 %341 }
  0x80   : > { %v352_v55 = vmul.f32 %v348_v25, %v342_v33  ;;  %v353_v56 = vmul.f32 %v349_v26, %v342_v33  ;;  %v1013_v25 = vld [vmem:[%s1261_s30 + $0x1] ss:$0 sm:$0xff] }
  0x88   : > { %v385_v52 = vpop.permute.xlu2 %384 }
  0x8d   : > { %v316_v10 = vpop.permute.xlu1 %315  ;;  %v296_v11 = vpop.permute.xlu0 %295 }
  0x8e   : > { %v328_v29 = vmul.f32 %v326_v19, %v316_v10  ;;  %v329_v30 = vmul.f32 %v327_v20, %v316_v10  ;;  %v310_v31 = vmul.f32 %v308_v21, %v296_v11  ;;  %v311_v32 = vmul.f32 %v309_v22, %v296_v11 }
  0x90   : > { %v332_v36 = vadd.f32 %v328_v29, %v310_v31  ;;  %v333_v37 = vadd.f32 %v329_v30, %v311_v32  ;;  %v549_v33 = vpop.permute.xlu2 %548 }
  0x92   : > { %v354_v48 = vadd.f32 %v350_v34, %v332_v36  ;;  %v355_v49 = vadd.f32 %v351_v35, %v333_v37  ;;  %v1014_v34 = vld [vmem:[%s1261_s30 + $0x4] ss:$0 sm:$0xff] }
  0x95   : > { %v320_v23 = vpop.permute.xlu1 %319  ;;  %v301_v24 = vpop.permute.xlu0 %300 }
  0x96   : > { %v330_v40 = vmul.f32 %v326_v19, %v320_v23  ;;  %v331_v41 = vmul.f32 %v327_v20, %v320_v23  ;;  %v312_v42 = vmul.f32 %v308_v21, %v301_v24  ;;  %v313_v43 = vmul.f32 %v309_v22, %v301_v24 }
  0x98   : > { %v334_v50 = vadd.f32 %v330_v40, %v312_v42  ;;  %v335_v51 = vadd.f32 %v331_v41, %v313_v43 }
  0x9a   : > { %v356_v61 = vadd.f32 %v352_v55, %v334_v50  ;;  %v357_v62 = vadd.f32 %v353_v56, %v335_v51 }
  0x9e   : > { %v364_v44 = vpop.permute.xlu1 %363  ;;  %v360_v45 = vpop.permute.xlu0 %359 }
  0x9f   : > { %v372_v46 = vmul.f32 %v370_v38, %v360_v45  ;;  %v373_v47 = vmul.f32 %v371_v39, %v360_v45  ;;  %v374_v57 = vmul.f32 %v370_v38, %v364_v44  ;;  %v375_v58 = vmul.f32 %v371_v39, %v364_v44 }
  0xa1   : > { %v376_v53 = vadd.f32 %v372_v46, %v354_v48  ;;  %v377_v54 = vadd.f32 %v373_v47, %v355_v49  ;;  %v378_v1 = vadd.f32 %v374_v57, %v356_v61  ;;  %v379_v2 = vadd.f32 %v375_v58, %v357_v62 }
  0xa3   : > { %v392_v59 = vadd.f32 %v385_v52, %v376_v53  ;;  %v393_v60 = vadd.f32 %v385_v52, %v377_v54 }
  0xa5   : > { %v396_v63 = vsub.f32 0.0, %v392_v59  ;;  %v397_v0 = vsub.f32 0.0, %v393_v60 }
  0xa7   : > { %v400_v3 = vmul.f32 1.442695, %v396_v63  ;;  %v402_v4 = vmul.f32 1.442695, %v397_v0  ;;  %v390_v5 = vpop.permute.xlu1 %389 }
  0xa8   : > { %v394_v6 = vadd.f32 %v390_v5, %v378_v1  ;;  %v395_v7 = vadd.f32 %v390_v5, %v379_v2 }
  0xa9   : > { %1021 = vpow2.f32 %v400_v3  ;;  %v603_v3 = vld [vmem:[%s1399_s4] sm:$0xf] }
  0xaa   : > { %1023 = vpow2.f32 %v402_v4  ;;  %v398_v8 = vsub.f32 0.0, %v394_v6  ;;  %v399_v10 = vsub.f32 0.0, %v395_v7 }
  0xac   : > { %v404_v11 = vmul.f32 1.442695, %v398_v8  ;;  %v406_v12 = vmul.f32 1.442695, %v399_v10 }
  0xae   : > { %1025 = vpow2.f32 %v404_v11 }
  0xaf   : > { %v1022_v13 = vpop.eup %1021  ;;  %1027 = vpow2.f32 %v406_v12 }
  0xb0   : > { %v1024_v14 = vpop.eup %1023  ;;  %v408_v15 = vadd.f32 1.0, %v1022_v13 }
  0xb1   : > { %v409_v16 = vadd.f32 1.0, %v1024_v14 }
  0xb2   : > { %1029 = vrcp.f32 %v408_v15 }
  0xb3   : > { %1031 = vrcp.f32 %v409_v16 }
  0xb4   : > { %v1026_v17 = vpop.eup %1025 }
  0xb5   : > { %v1028_v18 = vpop.eup %1027  ;;  %v410_v19 = vadd.f32 1.0, %v1026_v17 }
  0xb6   : > { %v411_v20 = vadd.f32 1.0, %v1028_v18  ;;  %v584_v18 = vld [vmem:[%s1397_s2] sm:$0xf] }
  0xb7   : > { %1033 = vrcp.f32 %v410_v19  ;;  %610 = vst [vmem:[#allocation1] ss:$4 sm:$0xff] %v584_v18 }
  0xb8   : > { %v1030_v21 = vpop.eup %1029  ;;  %1035 = vrcp.f32 %v411_v20 }
  0xb9   : > { %v1032_v22 = vpop.eup %1031  ;;  %v1289_v23 = vmul.f32 %v1030_v21, %v392_v59 }
  0xba   : > { %v417_v24 = vmul.f32 %v1032_v22, %v393_v60 }
  0xbb   : > { %520 = vrot.lane.b32.xlu0 %v1289_v23, %s1142_s1  ;;  %v434_v29 = vmul.f32 %v1013_v25, %v1289_v23  ;;  %v551_v35 = vmul.f32 %v549_v33, %v1289_v23 }
  0xbc   : > { %522 = vrot.lane.b32.xlu1 %v417_v24, %s1142_s1  ;;  %v552_v36 = vmul.f32 %v549_v33, %v417_v24 }
  0xbd   : > { %v1034_v26 = vpop.eup %1033 }
  0xbe   : > { %v1036_v27 = vpop.eup %1035  ;;  %v1293_v28 = vmul.f32 %v1034_v26, %v394_v6  ;;  %v555_v39 = vpack.c.bf16 %v552_v36, %v551_v35  ;;  %v1015_v6 = vld [vmem:[%s1261_s30 + $0x6] ss:$0 sm:$0xff]  ;;  %v1017_v26 = vld [vmem:[%s1261_s30 + $0x3] ss:$0 sm:$0xff] }
  0xbf   : > { %v419_v31 = vmul.f32 %v1036_v27, %v395_v7  ;;  %v1016_v7 = vld [vmem:[%s1261_s30 + $0x5] ss:$0 sm:$0xff]  ;;  %v1018_v27 = vld [vmem:[%s1261_s30 + $0x2] ss:$0 sm:$0xff] }
  0xc0   : > { %v435_v30 = vmul.f32 %v1013_v25, %v1293_v28  ;;  %524 = vrot.lane.b32.xlu2 %v1293_v28, %s1142_s1  ;;  %v553_v37 = vmul.f32 %v549_v33, %v1293_v28 }
  0xc1   : > { %v554_v38 = vmul.f32 %v549_v33, %v419_v31 }
  0xc2   : > { %v889_v32 = vpack.c.bf16 %v435_v30, %v434_v29  ;;  %v612_v29 = vld.sshfl [vmem:[#allocation1 + $0x8] sm:$0xff pattern:$0x73625140] }
  0xc3   : > { %526 = vrot.lane.b32.xlu0 %v419_v31, %s1142_s1  ;;  %v556_v40 = vpack.c.bf16 %v554_v38, %v553_v37 }
  0xc4   : > { %916 = vst [vmem:[#allocation2 + $0x8] sm:$0xff] %v889_v32   ;;  %456 = vrot.lane.b32.xlu1 %v1289_v23, %s1143_s5 }
  0xc8   : > { %458 = vrot.lane.b32.xlu2 %v417_v24, %s1143_s5 }
  0xcb   : > { %460 = vrot.lane.b32.xlu0 %v1293_v28, %s1143_s5 }
  0xcc   : > { %462 = vrot.lane.b32.xlu1 %v419_v31, %s1143_s5 }
  0xd0   : > { %484 = vrot.lane.b32.xlu2 %v1014_v34, %s1144_s16 }
  0xd3   : > { %559 = vrot.lane.b32.xlu0 %v555_v39, %s1142_s1 }
  0xd4   : > { %561 = vrot.lane.b32.xlu1 %v556_v40, %s1142_s1 }
 0x11a   : > { %v525_v41 = vpop.permute.xlu2 %524 }
 0x122   : > { %v459_v42 = vpop.permute.xlu2 %458 }
 0x12a   : > { %v485_v47 = vpop.permute.xlu2 %484 }
 0x12b   : > { %v487_v51 = vmul.f32 %v485_v47, %v1289_v23  ;;  %v488_v52 = vmul.f32 %v485_v47, %v417_v24  ;;  %v489_v53 = vmul.f32 %v485_v47, %v1293_v28  ;;  %v490_v54 = vmul.f32 %v485_v47, %v419_v31 }
 0x12d   : > { %v521_v43 = vpop.permute.xlu0 %520  ;;  %v491_v56 = vpack.c.bf16 %v488_v52, %v487_v51  ;;  %v492_v58 = vpack.c.bf16 %v490_v54, %v489_v53 }
 0x12e   : > { %v523_v44 = vpop.permute.xlu1 %522 }
 0x12f   : > { %v529_v45 = vsel %vm528_vm0, %v521_v43, %v523_v44 }
 0x130   : > { %533 = vrot.lane.b32.xlu2 %v529_v45, %s1145_s17 }
 0x135   : > { %v527_v46 = vpop.permute.xlu0 %526 }
 0x136   : > { %v457_v48 = vpop.permute.xlu1 %456  ;;  %v530_v49 = vsel %vm528_vm0, %v525_v41, %v527_v46  ;;  %v1020_v41 = vld [vmem:[%s1261_s30] ss:$0 sm:$0xff] }
 0x137   : > { %v465_v50 = vsel %vm464_vm1, %v457_v48, %v459_v42  ;;  %535 = vrot.lane.b32.xlu0 %v530_v49, %s1145_s17 }
 0x138   : > { %508 = vrot.lane.b32.xlu1 %v465_v50, %s1146_s18 }
 0x13d   : > { %v461_v55 = vpop.permute.xlu0 %460 }
 0x13e   : > { %v463_v57 = vpop.permute.xlu1 %462 }
 0x13f   : > { %v466_v59 = vsel %vm464_vm1, %v461_v55, %v463_v57  ;;  %495 = vrot.lane.b32.xlu0 %v491_v56, %s1143_s5  ;;  %v873_v56 = vld [vmem:[#allocation2 + $0x8] sm:$0xff] }
 0x140   : > { %497 = vrot.lane.b32.xlu1 %v492_v58, %s1143_s5  ;;  %510 = vrot.lane.b32.xlu2 %v466_v59, %s1146_s18 }
 0x145   : > { %v560_v60 = vpop.permute.xlu0 %559 }
 0x146   : > { %v562_v61 = vpop.permute.xlu1 %561  ;;  %v563_v62 = vrot.slane %v560_v60, 4 }
 0x147   : > { %v564_v63 = vrot.slane %v562_v61, 4  ;;  %471 = vrot.lane.b32.xlu0 %v466_v59, %s1145_s17 }
 0x148   : > { %v566_v0 = vsel %vm528_vm0, %v560_v60, %v563_v62  ;;  %440 = vrot.lane.b32.xlu1 %v1289_v23, %s1146_s18  ;;  %469 = vrot.lane.b32.xlu2 %v465_v50, %s1145_s17 }
 0x149   : > { %v567_v1 = vsel %vm528_vm0, %v562_v61, %v564_v63  ;;  %570 = vst [vmem:[#allocation2 + $0x38] sm:$0xf] %v566_v0 }
 0x14a   : > { %571 = vst [vmem:[#allocation2 + $0x3c] sm:$0xf] %v567_v1 }
 0x14f   : > { %420 = vrot.lane.b32.xlu0 %v1289_v23, %s1145_s17 }
 0x150   : > { %422 = vrot.lane.b32.xlu1 %v1293_v28, %s1145_s17  ;;  %442 = vrot.lane.b32.xlu2 %v1293_v28, %s1146_s18  ;;  %v611_v28 = vld.sshfl [vmem:[#allocation1] sm:$0xff pattern:$0x73625140] }
 0x151   : > { %v879_v2 = vld [vmem:[#allocation2 + $0x38] sm:$0xff]  ;;  %703 = vst [vmem:[#allocation1] ss:$2 sm:$0xff] %v1279_v9 }
 0x152   : > { %671 = vmatpush.bf16.msra.mxu0 %v879_v2 }
 0x157   : > { %574 = vrot.lane.b32.xlu0 %v530_v49, %s1146_s18  ;;  %v1019_v49 = vld [vmem:[%s1261_s30 + $0x8] ss:$0 sm:$0xff]  ;;  %s867_s30 = sshll.u32 %s1123_s25, 1 }
 0x158   : > { %606 = vperm.xlu1 %1010, %v603_v3   ;;  %572 = vrot.lane.b32.xlu2 %v529_v45, %s1146_s18  ;;  %v705_v42 = vld.sshfl [vmem:[#allocation1 + $0x8] sm:$0xff pattern:$0x75316420]  ;;  %v704_v9 = vld.sshfl [vmem:[#allocation1] sm:$0xff pattern:$0x75316420]  ;;  %s725_s13 = sadd.s32 %s1119_s24, %s867_s30 }
 0x159   : > { %s868_s1 = sshll.u32 %s725_s13, 2  ;;  %s273_s18 = scalar_lea.vmem [#allocation3], %s823_s14 }
 0x15a   : > { %s727_s17 = scalar_lea.hbm %s1401_s6, %s868_s1  ;;  %s729_s19 = sshll.u32 %s273_s18, 4  ;;  %s730_s19 = int_to_ptr.vmem [resolvable:$true] %s729_s19 }
 0x15b   : > { %s731_s25 = sshll.u32 %s727_s17, 4  ;;  %s715_s24 = scalar_lea.sflag [#allocation4], %s271_s12  ;;  %s732_s25 = int_to_ptr.hbm [resolvable:$true] %s731_s25 }
 0x15c   : > { %s1055_s20 = sshra.s32 %s732_s25, 4  ;;  %s1061_s13 = scalar_lea.hbm %s1401_s6, 16  ;;  %s1056_s20 = int_to_ptr.hbm [resolvable:$true] %s1055_s20 }
 0x15d   : > { %s1057_s29 = scalar_lea.hbm %s1056_s20, 4  ;;  %p1062_p4 = scmp.lt.s32.totalorder %s1056_s20, %s1401_s6 }
 0x15e   : > { %p1058_p0 = scmp.ne.s32.totalorder %s1056_s20, %s1057_s29  ;;  %p1063_p5 = scmp.lt.s32.totalorder %s1061_s13, %s1057_s29 }
 0x15f   : > { %708 = vrot.lane.b32.xlu0 %v705_v42, %s1143_s5 }
 0x160   : > { %706 = vrot.lane.b32.xlu2 %v704_v9, %s1143_s5  ;;  %p1059_p1 = pnand %p1058_p0, %p1233_p3  ;;  %p1064_p6 = por %p1063_p5, %p1062_p4 }
 0x162   : > { %p1060_p2 = pneg %p1059_p1 }
 0x164   : > { %p1065_p7 = pnand %p1064_p6, %p1060_p2 }
 0x18a   : > { %v534_v4 = vpop.permute.xlu2 %533 }
 0x18b   : > { %v539_v10 = vmul.f32 %v1015_v6, %v534_v4 }
 0x19a   : > { %v511_v5 = vpop.permute.xlu2 %510 }
 0x19b   : > { %v515_v13 = vmul.f32 %v1016_v7, %v511_v5 }
 0x1a2   : > { %v470_v17 = vpop.permute.xlu2 %469 }
 0x1a3   : > { %v475_v33 = vmul.f32 %v1017_v26, %v470_v17 }
 0x1a9   : > { %v536_v8 = vpop.permute.xlu0 %535 }
 0x1aa   : > { %v509_v11 = vpop.permute.xlu1 %508  ;;  %v540_v12 = vmul.f32 %v1015_v6, %v536_v8  ;;  %v443_v30 = vpop.permute.xlu2 %442 }
 0x1ab   : > { %v514_v14 = vmul.f32 %v1016_v7, %v509_v11  ;;  %v447_v36 = vmul.f32 %v1018_v27, %v443_v30 }
 0x1ac   : > { %v909_v15 = vpack.c.bf16 %v540_v12, %v539_v10 }
 0x1ad   : > { %v904_v16 = vpack.c.bf16 %v515_v13, %v514_v14 }
 0x1ae   : > { %920 = vst [vmem:[#allocation2 + $0x30] sm:$0xff] %v909_v15  }
 0x1af   : > { %919 = vst [vmem:[#allocation2 + $0x28] sm:$0xff] %v904_v16  }
 0x1b1   : > { %v496_v19 = vpop.permute.xlu0 %495 }
 0x1b2   : > { %v498_v20 = vpop.permute.xlu1 %497  ;;  %v499_v21 = vrot.slane %v496_v19, 4  ;;  %v573_v50 = vpop.permute.xlu2 %572 }
 0x1b3   : > { %v500_v22 = vrot.slane %v498_v20, 4  ;;  %v578_v53 = vmul.f32 %v1019_v49, %v573_v50 }
 0x1b4   : > { %v502_v23 = vsel %vm464_vm1, %v496_v19, %v499_v21 }
 0x1b5   : > { %v503_v24 = vsel %vm464_vm1, %v498_v20, %v500_v22  ;;  %506 = vst [vmem:[#allocation2 + $0x20] sm:$0xf] %v502_v23  ;;  %v878_v25 = vld [vmem:[#allocation2 + $0x30] sm:$0xff] }
 0x1b6   : > { %507 = vst [vmem:[#allocation2 + $0x24] sm:$0xf] %v503_v24  ;;  %672 = vmatpush.bf16.msra.mxu0 %v878_v25  ;;  %v877_v32 = vld [vmem:[#allocation2 + $0x28] sm:$0xff] }
 0x1b9   : > { %v472_v31 = vpop.permute.xlu0 %471 }
 0x1ba   : > { %v441_v34 = vpop.permute.xlu1 %440  ;;  %v476_v35 = vmul.f32 %v1017_v26, %v472_v31  ;;  %673 = vmatpush.bf16.msra.mxu0 %v877_v32  ;;  %v707_v6 = vpop.permute.xlu2 %706 }
 0x1bb   : > { %v446_v37 = vmul.f32 %v1018_v27, %v441_v34 }
 0x1bc   : > { %v899_v38 = vpack.c.bf16 %v476_v35, %v475_v33 }
 0x1bd   : > { %v894_v39 = vpack.c.bf16 %v447_v36, %v446_v37  ;;  %v876_v40 = vld [vmem:[#allocation2 + $0x20] sm:$0xff] }
 0x1be   : > { %918 = vst [vmem:[#allocation2 + $0x18] sm:$0xff] %v899_v38   ;;  %674 = vmatpush.bf16.msra.mxu0 %v876_v40 }
 0x1bf   : > { %917 = vst [vmem:[#allocation2 + $0x10] sm:$0xff] %v894_v39  }
 0x1c1   : > { %v421_v43 = vpop.permute.xlu0 %420 }
 0x1c2   : > { %v423_v44 = vpop.permute.xlu1 %422  ;;  %v426_v45 = vmul.f32 %v1020_v41, %v421_v43 }
 0x1c3   : > { %v427_v46 = vmul.f32 %v1020_v41, %v423_v44 }
 0x1c5   : > { %v884_v47 = vpack.c.bf16 %v427_v46, %v426_v45  ;;  %v875_v48 = vld [vmem:[#allocation2 + $0x18] sm:$0xff] }
 0x1c6   : > { %675 = vmatpush.bf16.msra.mxu0 %v875_v48  ;;  %v874_v52 = vld [vmem:[#allocation2 + $0x10] sm:$0xff] }
 0x1c7   : > { %885 = vst [vmem:[#allocation2] sm:$0xff] %v884_v47  }
 0x1c9   : > { %v575_v51 = vpop.permute.xlu0 %574 }
 0x1ca   : > { %v579_v54 = vmul.f32 %v1019_v49, %v575_v51  ;;  %676 = vmatpush.bf16.msra.mxu0 %v874_v52  ;;  %v607_v60 = vpop.permute.xlu1 %606 }
 0x1cc   : > { %v914_v55 = vpack.c.bf16 %v579_v54, %v578_v53 }
 0x1ce   : > { %921 = vst [vmem:[#allocation2 + $0x40] sm:$0xff] %v914_v55   ;;  %677 = vmatpush.bf16.msra.mxu0 %v873_v56  ;;  %v872_v57 = vld [vmem:[#allocation2] sm:$0xff] }
 0x1d1   : > { %v709_v7 = vpop.permute.xlu0 %708 }
 0x1d2   : > { %678 = vmatpush.bf16.msra.mxu0 %v872_v57  ;;  %v710_v10 = vsel %vm464_vm1, %v707_v6, %v709_v7 }
 0x1d5   : > { %v880_v58 = vld [vmem:[#allocation2 + $0x40] sm:$0xff]  ;;  %679 = vmatmul.bf16.vlgmr.msra.gmra.mxu0 %v611_v28 }
 0x1d6   : > { %691 = vmatpush.bf16.msra.mxu1 %v880_v58 }
 0x1d9   : > { %865 = vmatmul.msk.bf16.vlgmr.msra.gmra.mxu1 %vm668_vm2, %v612_v29 }
 0x252   : > { %v680_v59 = vpop.f32.mrf.mxu0 }
 0x253   : > { %v681_v61 = vadd.f32 %v680_v59, %v607_v60 }
 0x256   : > { %v693_v62 = vpop.f32.mrf.mxu1 }
 0x257   : > { %v694_v63 = vadd.f32 %v693_v62, %v681_v61 }
 0x259   : > { %v697_v0 = vsub.f32 0.0, %v694_v63 }
 0x25a   : > { %v682_v1 = vpop.f32.mrf.mxu0 }
 0x25b   : > { %v698_v2 = vmul.f32 1.442695, %v697_v0 }
 0x25d   : > { %1037 = vpow2.f32 %v698_v2 }
 0x25e   : > { %v695_v3 = vpop.f32.mrf.mxu1 }
 0x263   : > { %v1038_v4 = vpop.eup %1037 }
 0x264   : > { %v700_v5 = vadd.f32 1.0, %v1038_v4 }
 0x266   : > { %1039 = vrcp.f32 %v700_v5 }
 0x26c   : > { %v1040_v8 = vpop.eup %1039 }
 0x26d   : > { %v702_v11 = vmul.f32 %v1040_v8, %v694_v63 }
 0x26f   : > { %v712_v12 = vadd.f32 %v710_v10, %v702_v11 }
 0x271   : > { %713 = vst [vmem:[%s273_s18] sm:$0xf] %v712_v12 }
 0x272   : > { %1068 = shalt.err (!%p1065_p7)
}
 0x273   : > { %923 = dma.vmem_to_hbm [thread:$0]  (%p1233_p3), %s730_s19, 64, %s732_s25, %s715_s24  }
 0x274 PF: > { %p929_p9 = scmp.ge.s32.totalorder %s1135_s28, 2  ;;  %s743_s12 = sand.u32 1, %s1107_s21  }
 0x275   : > { %s744_s5 = scalar_lea.sflag [#allocation4], %s743_s12 }
 0x276   : > { %p926_p10 = pnand %p929_p9, %p1242_p8 }
 0x278   : > { %p927_p11 = pneg %p926_p10 }
 0x27a   : > { %1102 = dma.done.wait (%p927_p11), %s744_s5, 64  }
 0x27b   : > { %1104 = vsyncadd (%p927_p11), %s744_s5, 4294967232  ;;  %s19_s28 = sadd.s32 1, %s1135_s28   ;;  %s1408_s21 = smov %s1111_s22 }
 0x27c   : > { %p16_p12 = scmp.ge.s32.totalorder %s19_s28, 6   ;;  %s1409_s22 = smov %s1115_s23 }
 0x27d   : > { %s1410_s23 = smov %s1251_s15  ;;  %s1411_s24 = smov %s1127_s26 }
 0x27e   : > { %s1412_s25 = smov %s1131_s27  ;;  %s1413_s26 = smov %s1416_s7 }
 0x27f   : > { %s1414_s27 = smov %s1420_s8  ;;  %18 = sbr.rel (!%p16_p12) target bundleno = 8 (0x8), region = 83 }
 0x284   :  { %750 = vsyncpa [#allocation4], 1 }
 0x285   :  { %752 = vsyncpa [#allocation4 + $0x1], 1 }

</bundles_post_ra>
